<compile_context>
chip_gen: v7x
topology: tpu7x:2x2x1
jax: 0.10.0
libtpu: 0.0.40
codegen_flags: <defaults>
</compile_context>

<pallas_src>
import functools

import jax
import jax.numpy as jnp
from jax.experimental import pallas as pl
from jax.experimental.pallas import tpu as pltpu

LANE = 128


def _round_up(n, m):
    return ((n + m - 1) // m) * m


def _pad2d(x, rows, cols):
    r, c = x.shape
    return jnp.pad(x, ((0, rows - r), (0, cols - c)))


# ---------------------------------------------------------------------------
# Kernel: one SAGEConv layer, tiled over (row tiles i, neighbour tiles k).
# ---------------------------------------------------------------------------
def _sage_layer_kernel(a_ref, hk_ref, hi_ref, wl_ref, b_ref, wr_ref,
                       out_ref, acc_ref, *, activation, num_classes):
    k = pl.program_id(1)

    @pl.when(k == 0)
    def _():
        acc_ref[...] = jnp.zeros_like(acc_ref)

    # Partial mean aggregation: acc[i] += A[i, k] @ h[k]
    # (bf16 x bf16 on the MXU, f32 accumulation).
    acc_ref[...] += jnp.dot(a_ref[...], hk_ref[...].astype(jnp.bfloat16),
                            preferred_element_type=jnp.float32)

    @pl.when(k == pl.num_programs(1) - 1)
    def _():
        agg = acc_ref[...]
        z = (jnp.dot(agg, wl_ref[...], preferred_element_type=jnp.float32)
             + b_ref[...]
             + jnp.dot(hi_ref[...], wr_ref[...],
                       preferred_element_type=jnp.float32))
        if activation == "relu":
            out_ref[...] = jnp.maximum(z, 0.0)
        else:
            # Final layer: log_softmax over the real class lanes only; the
            # zero-padded class lanes are masked to -inf so they do not change
            # the max / sum (padded lanes are sliced off in the wrapper).
            cols = jax.lax.broadcasted_iota(jnp.int32, z.shape, 1)
            z = jnp.where(cols < num_classes, z, -jnp.inf)
            m = jnp.max(z, axis=1, keepdims=True)
            zs = z - m
            lse = jnp.log(jnp.sum(jnp.exp(zs), axis=1, keepdims=True))
            out_ref[...] = zs - lse


def _vmem_limit_bytes(tm, tk, fin, fout):
    need = (2 * (tm * tk * 2)                       # A tiles (bf16), 2x buffered
            + 2 * (tk * fin * 4)                    # neighbour h tiles
            + 2 * (tm * fin * 4)                    # root h tiles
            + 2 * (tm * fout * 4)                   # output tiles
            + 2 * (2 * fin * fout * 4 + LANE * fout * 4)   # weights + bias
            + tm * fin * 4)                         # accumulator scratch
    return int(min(max(4 * need, 16 << 20), 48 << 20))


def _sage_layer(a_bf16, h, wl, b, wr, *, activation, num_classes, tm, tk):
    n_pad, fin = h.shape
    fout = wl.shape[1]
    grid = (n_pad // tm, n_pad // tk)

    kernel = functools.partial(_sage_layer_kernel, activation=activation,
                               num_classes=num_classes)

    return pl.pallas_call(
        kernel,
        out_shape=jax.ShapeDtypeStruct((n_pad, fout), jnp.float32),
        grid_spec=pltpu.PrefetchScalarGridSpec(
            num_scalar_prefetch=0,
            grid=grid,
            in_specs=[
                pl.BlockSpec((tm, tk), lambda i, k: (i, k)),      # A row/col tile
                pl.BlockSpec((tk, fin), lambda i, k: (k, 0)),     # h neighbour rows
                pl.BlockSpec((tm, fin), lambda i, k: (i, 0)),     # h root rows
                pl.BlockSpec((fin, fout), lambda i, k: (0, 0)),   # W_l
                pl.BlockSpec((1, fout), lambda i, k: (0, 0)),     # bias
                pl.BlockSpec((fin, fout), lambda i, k: (0, 0)),   # W_r
            ],
            out_specs=pl.BlockSpec((tm, fout), lambda i, k: (i, 0)),
            scratch_shapes=[pltpu.VMEM((tm, fin), jnp.float32)],
        ),
        compiler_params=pltpu.CompilerParams(
            dimension_semantics=("parallel", "arbitrary"),
            vmem_limit_bytes=_vmem_limit_bytes(tm, tk, fin, fout)),
    )(a_bf16, h, h, wl, b, wr)


# ---------------------------------------------------------------------------
# Wrapper / glue
# ---------------------------------------------------------------------------
def build_mean_agg_matrix(edge_index, num_nodes):
    """Dense mean-aggregation operator from a (2, E) edge_index (src, dst)."""
    src, dst = edge_index[0], edge_index[1]
    A = jnp.zeros((num_nodes, num_nodes), jnp.float32)
    A = A.at[dst, src].add(1.0)                       # count messages j -> i
    deg = jnp.sum(A, axis=1, keepdims=True)
    return A / jnp.maximum(deg, 1.0)                  # rows with deg=0 stay zero


def gs_forward(x, edge_index, params, *, tile=256):
    N, F = x.shape
    H = params["w1l"].shape[1]
    C = params["w3l"].shape[1]

    n_pad = _round_up(max(N, tile), tile)
    f_pad = _round_up(F, LANE)
    h_pad = _round_up(H, LANE)
    c_pad = _round_up(C, LANE)

    # Dense mean-aggregation operator, zero-padded and stored in bf16.
    # (Padded node rows/cols are zero, so they never contribute to real nodes.)
    A = build_mean_agg_matrix(edge_index, N)
    A = _pad2d(A, n_pad, n_pad).astype(jnp.bfloat16)

    x_p = _pad2d(x, n_pad, f_pad)
    w1l = _pad2d(params["w1l"], f_pad, h_pad)
    w1r = _pad2d(params["w1r"], f_pad, h_pad)
    b1 = _pad2d(params["b1"], 1, h_pad)
    w2l = _pad2d(params["w2l"], h_pad, h_pad)
    w2r = _pad2d(params["w2r"], h_pad, h_pad)
    b2 = _pad2d(params["b2"], 1, h_pad)
    w3l = _pad2d(params["w3l"], h_pad, c_pad)
    w3r = _pad2d(params["w3r"], h_pad, c_pad)
    b3 = _pad2d(params["b3"], 1, c_pad)

    tm = tk = tile
    h1 = _sage_layer(A, x_p, w1l, b1, w1r, activation="relu",
                     num_classes=0, tm=tm, tk=tk)
    h2 = _sage_layer(A, h1, w2l, b2, w2r, activation="relu",
                     num_classes=0, tm=tm, tk=tk)
    z = _sage_layer(A, h2, w3l, b3, w3r, activation="log_softmax",
                    num_classes=C, tm=tm, tk=tk)
    return z[:N, :C]


def gs_reference(x, edge_index, params):
    """Pure-JAX f32 reference of the same forward pass."""
    A = build_mean_agg_matrix(edge_index, x.shape[0])
    h = x
    h = jnp.maximum(A @ h @ params["w1l"] + params["b1"] + h @ params["w1r"], 0.0)
    h = jnp.maximum(A @ h @ params["w2l"] + params["b2"] + h @ params["w2r"], 0.0)
    z = A @ h @ params["w3l"] + params["b3"] + h @ params["w3r"]
    return jax.nn.log_softmax(z, axis=1)


def init_params(key, num_feat, hid, num_classes):
    ks = jax.random.split(key, 6)

    def lin(k, fan_in, fan_out):
        scale = 1.0 / jnp.sqrt(jnp.float32(fan_in))
        return jax.random.uniform(k, (fan_in, fan_out), jnp.float32, -scale, scale)

    return {
        "w1l": lin(ks[0], num_feat, hid),
        "w1r": lin(ks[1], num_feat, hid),
        "b1":  jnp.zeros((1, hid), jnp.float32),
        "w2l": lin(ks[2], hid, hid),
        "w2r": lin(ks[3], hid, hid),
        "b2":  jnp.zeros((1, hid), jnp.float32),
        "w3l": lin(ks[4], hid, num_classes),
        "w3r": lin(ks[5], hid, num_classes),
        "b3":  jnp.zeros((1, num_classes), jnp.float32),
    }


if __name__ == "__main__":
    # Small shapes consistent with the module defaults.
    N, NUM_FEAT, HID, NUM_CLASSES, NUM_EDGES = 16, 8, 16, 10, 40

    key = jax.random.PRNGKey(0)
    kx, ke, kp = jax.random.split(key, 3)

    x = jax.random.normal(kx, (N, NUM_FEAT), jnp.float32)
    edge_index = jax.random.randint(ke, (2, NUM_EDGES), 0, N, jnp.int32)
    params = init_params(kp, NUM_FEAT, HID, NUM_CLASSES)

    out = jax.block_until_ready(gs_forward(x, edge_index, params, tile=256))
    ref = gs_reference(x, edge_index, params)
    assert out.shape == (N, NUM_CLASSES)
    assert jnp.allclose(out, ref, rtol=2e-2, atol=2e-2), "mismatch vs reference"

    # Second check that exercises a multi-tile grid (row axis) and the
    # multi-step reduction accumulator on the neighbour axis.
    N2, E2 = 320, 1280
    kx2, ke2, kp2 = jax.random.split(jax.random.PRNGKey(1), 3)
    x2 = jax.random.normal(kx2, (N2, NUM_FEAT), jnp.float32)
    ei2 = jax.random.randint(ke2, (2, E2), 0, N2, jnp.int32)
    p2 = init_params(kp2, NUM_FEAT, HID, NUM_CLASSES)
    out2 = jax.block_until_ready(gs_forward(x2, ei2, p2, tile=128))
    ref2 = gs_reference(x2, ei2, p2)
    assert out2.shape == (N2, NUM_CLASSES)
    assert jnp.allclose(out2, ref2, rtol=2e-2, atol=2e-2), "mismatch vs reference (tiled)"

    print("KERNEL_OK")
</pallas_src>

<mosaic_0001>
module attributes {stable_mosaic.version = 11 : i64} {
  func.func @_sage_layer_kernel(%arg0: i32, %arg1: i32, %arg2: memref<256x256xbf16, #tpu.memory_space<vmem>>, %arg3: memref<256x128xf32, #tpu.memory_space<vmem>>, %arg4: memref<256x128xf32, #tpu.memory_space<vmem>>, %arg5: memref<128x128xf32, #tpu.memory_space<vmem>>, %arg6: memref<1x128xf32, #tpu.memory_space<vmem>>, %arg7: memref<128x128xf32, #tpu.memory_space<vmem>>, %arg8: memref<256x128xf32, #tpu.memory_space<vmem>>, %arg9: memref<256x128xf32, #tpu.memory_space<vmem>>) attributes {dimension_semantics = [#tpu.dimension_semantics<parallel>, #tpu.dimension_semantics<arbitrary>], iteration_bounds = array<i64: 1, 1>, scalar_prefetch = 0 : i64, scratch_operands = 1 : i64, tpu.core_type = #tpu.core_type<tc>, window_params = [{transform_indices = @transform_0, window_bounds = array<i64: 256, 256>}, {transform_indices = @transform_1, window_bounds = array<i64: 256, 128>}, {transform_indices = @transform_2, window_bounds = array<i64: 256, 128>}, {pipeline_mode = #tpu.pipeline_mode<synchronous>, transform_indices = @transform_3, window_bounds = array<i64: 128, 128>}, {pipeline_mode = #tpu.pipeline_mode<synchronous>, transform_indices = @transform_4, window_bounds = array<i64: 1, 128>}, {pipeline_mode = #tpu.pipeline_mode<synchronous>, transform_indices = @transform_5, window_bounds = array<i64: 128, 128>}, {transform_indices = @transform_6, window_bounds = array<i64: 256, 128>}]} {
    %c0_i32 = arith.constant 0 : i32
    %0 = arith.cmpi eq, %arg1, %c0_i32 : i32
    %1 = arith.extui %0 : i1 to i32
    %c0_i32_0 = arith.constant 0 : i32
    %2 = arith.cmpi ne, %1, %c0_i32_0 : i32
    scf.if %2 {
      %cst_10 = arith.constant 0.000000e+00 : f32
      %13 = vector.broadcast %cst_10 : f32 to vector<256x128xf32>
      %c0_11 = arith.constant 0 : index
      %c0_12 = arith.constant 0 : index
      %14 = vector.load %arg9[%c0_11, %c0_12] : memref<256x128xf32, #tpu.memory_space<vmem>>, vector<256x128xf32>
      tpu.vector_store %arg9[%c0_11, %c0_12], %13 {strides = array<i32>} : memref<256x128xf32, #tpu.memory_space<vmem>>, vector<256x128xf32>,
    } else {
    }
    %c0 = arith.constant 0 : index
    %c0_1 = arith.constant 0 : index
    %3 = vector.load %arg9[%c0, %c0_1] : memref<256x128xf32, #tpu.memory_space<vmem>>, vector<256x128xf32>
    %c0_2 = arith.constant 0 : index
    %c0_3 = arith.constant 0 : index
    %4 = vector.load %arg2[%c0_2, %c0_3] : memref<256x256xbf16, #tpu.memory_space<vmem>>, vector<256x256xbf16>
    %c0_4 = arith.constant 0 : index
    %c0_5 = arith.constant 0 : index
    %5 = vector.load %arg3[%c0_4, %c0_5] : memref<256x128xf32, #tpu.memory_space<vmem>>, vector<256x128xf32>
    %6 = arith.truncf %5 : vector<256x128xf32> to vector<256x128xbf16>
    %cst = arith.constant dense<0.000000e+00> : vector<256x128xf32>
    %7 = tpu.matmul %4, %6, %cst {dimension_numbers = #tpu.dot_dimension_numbers<[1], [0], [0], [1], [0, 0, 1, 1], [], []>} : vector<256x256xbf16>, vector<256x128xbf16>, vector<256x128xf32> -> vector<256x128xf32>
    %8 = arith.addf %3, %7 : vector<256x128xf32>
    %c0_6 = arith.constant 0 : index
    %c0_7 = arith.constant 0 : index
    %9 = vector.load %arg9[%c0_6, %c0_7] : memref<256x128xf32, #tpu.memory_space<vmem>>, vector<256x128xf32>
    tpu.vector_store %arg9[%c0_6, %c0_7], %8 {strides = array<i32>} : memref<256x128xf32, #tpu.memory_space<vmem>>, vector<256x128xf32>,
    %c0_i32_8 = arith.constant 0 : i32
    %10 = arith.cmpi eq, %arg1, %c0_i32_8 : i32
    %11 = arith.extui %10 : i1 to i32
    %c0_i32_9 = arith.constant 0 : i32
    %12 = arith.cmpi ne, %11, %c0_i32_9 : i32
    scf.if %12 {
      %c0_10 = arith.constant 0 : index
      %c0_11 = arith.constant 0 : index
      %13 = vector.load %arg9[%c0_10, %c0_11] : memref<256x128xf32, #tpu.memory_space<vmem>>, vector<256x128xf32>
      %c0_12 = arith.constant 0 : index
      %c0_13 = arith.constant 0 : index
      %14 = vector.load %arg5[%c0_12, %c0_13] : memref<128x128xf32, #tpu.memory_space<vmem>>, vector<128x128xf32>
      %cst_14 = arith.constant dense<0.000000e+00> : vector<256x128xf32>
      %15 = tpu.matmul %13, %14, %cst_14 {dimension_numbers = #tpu.dot_dimension_numbers<[1], [0], [0], [1], [0, 0, 1, 1], [], []>} : vector<256x128xf32>, vector<128x128xf32>, vector<256x128xf32> -> vector<256x128xf32>
      %c0_15 = arith.constant 0 : index
      %c0_16 = arith.constant 0 : index
      %16 = vector.load %arg6[%c0_15, %c0_16] : memref<1x128xf32, #tpu.memory_space<vmem>>, vector<1x128xf32>
      %17 = vector.broadcast %16 : vector<1x128xf32> to vector<256x128xf32>
      %18 = arith.addf %15, %17 : vector<256x128xf32>
      %c0_17 = arith.constant 0 : index
      %c0_18 = arith.constant 0 : index
      %19 = vector.load %arg4[%c0_17, %c0_18] : memref<256x128xf32, #tpu.memory_space<vmem>>, vector<256x128xf32>
      %c0_19 = arith.constant 0 : index
      %c0_20 = arith.constant 0 : index
      %20 = vector.load %arg7[%c0_19, %c0_20] : memref<128x128xf32, #tpu.memory_space<vmem>>, vector<128x128xf32>
      %cst_21 = arith.constant dense<0.000000e+00> : vector<256x128xf32>
      %21 = tpu.matmul %19, %20, %cst_21 {dimension_numbers = #tpu.dot_dimension_numbers<[1], [0], [0], [1], [0, 0, 1, 1], [], []>} : vector<256x128xf32>, vector<128x128xf32>, vector<256x128xf32> -> vector<256x128xf32>
      %22 = arith.addf %18, %21 : vector<256x128xf32>
      %cst_22 = arith.constant 0.000000e+00 : f32
      %23 = vector.broadcast %cst_22 : f32 to vector<256x128xf32>
      %24 = arith.maximumf %22, %23 : vector<256x128xf32>
      %c0_23 = arith.constant 0 : index
      %c0_24 = arith.constant 0 : index
      %25 = vector.load %arg8[%c0_23, %c0_24] : memref<256x128xf32, #tpu.memory_space<vmem>>, vector<256x128xf32>
      tpu.vector_store %arg8[%c0_23, %c0_24], %24 {strides = array<i32>} : memref<256x128xf32, #tpu.memory_space<vmem>>, vector<256x128xf32>,
    } else {
    }
    return
  }
  func.func @transform_0(%arg0: i32, %arg1: i32) -> (i32, i32) {
    %c0_i32 = arith.constant 0 : i32
    return %arg0, %arg1 : i32, i32
  }
  func.func @transform_1(%arg0: i32, %arg1: i32) -> (i32, i32) {
    %c0_i32 = arith.constant 0 : i32
    %c0_i32_0 = arith.constant 0 : i32
    return %arg1, %c0_i32 : i32, i32
  }
  func.func @transform_2(%arg0: i32, %arg1: i32) -> (i32, i32) {
    %c0_i32 = arith.constant 0 : i32
    %c0_i32_0 = arith.constant 0 : i32
    return %arg0, %c0_i32 : i32, i32
  }
  func.func @transform_3(%arg0: i32, %arg1: i32) -> (i32, i32) {
    %c0_i32 = arith.constant 0 : i32
    %c0_i32_0 = arith.constant 0 : i32
    %c0_i32_1 = arith.constant 0 : i32
    return %c0_i32, %c0_i32_0 : i32, i32
  }
  func.func @transform_4(%arg0: i32, %arg1: i32) -> (i32, i32) {
    %c0_i32 = arith.constant 0 : i32
    %c0_i32_0 = arith.constant 0 : i32
    %c0_i32_1 = arith.constant 0 : i32
    return %c0_i32, %c0_i32_0 : i32, i32
  }
  func.func @transform_5(%arg0: i32, %arg1: i32) -> (i32, i32) {
    %c0_i32 = arith.constant 0 : i32
    %c0_i32_0 = arith.constant 0 : i32
    %c0_i32_1 = arith.constant 0 : i32
    return %c0_i32, %c0_i32_0 : i32, i32
  }
  func.func @transform_6(%arg0: i32, %arg1: i32) -> (i32, i32) {
    %c0_i32 = arith.constant 0 : i32
    %c0_i32_0 = arith.constant 0 : i32
    return %arg0, %c0_i32 : i32, i32
  }
}

</mosaic_0001>

<bundles_post_ra>
// kernel: tpu_custom_call.1
= control target key start
LH: loop header
LB: loop body
LE: loop exit
PB: predicated region body
PF: predicated region fallthrough
CT: control target
= control target key end

     0   :  { %11 = vsyncpa [#allocation4], 0  ;;  %s2206_s0 = inlined_call_operand.hbm [shape: bf16[256,256], index: 0, kind: input, shape index: {}]   ;;  %s2207_s1 = inlined_call_operand.hbm [shape: f32[256,128], index: 1, kind: input, shape index: {}]   ;;  %s2208_s2 = inlined_call_operand.hbm [shape: f32[256,128], index: 2, kind: input, shape index: {}]   ;;  %s2209_s3 = inlined_call_operand.hbm [shape: f32[128,128], index: 3, kind: input, shape index: {}]   ;;  %s2210_s4 = inlined_call_operand.vmem [shape: f32[1,128], index: 4, kind: input, shape index: {}]   ;;  %s2211_s5 = inlined_call_operand.hbm [shape: f32[128,128], index: 5, kind: input, shape index: {}]   ;;  %s2212_s6 = inlined_call_operand.hbm [shape: f32[256,128], index: 6, kind: output, shape index: {}]  }
   0x1   :  { %12 = vsyncpa [#allocation7], 0 }
   0x2   :  { %13 = vsyncpa [#allocation10], 0 }
   0x3   :  { %14 = vsyncpa [#allocation5], 0  ;;  %s2022_s21 = smov [#allocation6]   ;;  %s2023_s23 = smov [#allocation9]  }
   0x4   :  { %s32_s22 = sshll.u32 %s2022_s21, 4  ;;  %s56_s24 = sshll.u32 %s2023_s23, 4  ;;  %s33_s22 = int_to_ptr.vmem [resolvable:$true] %s32_s22  ;;  %s2065_s24 = int_to_ptr.vmem [resolvable:$true] %s56_s24 }
   0x5   :  { %s1882_s27 = scalar_lea.hbm %s2207_s1, 4096 }
   0x6   :  { %p1883_p0 = scmp.ne.s32.totalorder %s2207_s1, %s1882_s27  ;;  %p1886_p1 = scmp.lt.u32.totalorder %s1882_s27, %s2207_s1 }
   0x8   :  { %p1888_p2 = pnand %p1886_p1, %p1883_p0 }
   0xa   :  { %1891 = shalt.err (!%p1888_p2)
}
   0xb   :  { %s1892_s8 = scalar_lea.vmem %s33_s22, 4096  ;;  %p1897_p4 = scmp.lt.s32.totalorder %s33_s22, %s33_s22 }
   0xc   :  { %p1893_p3 = scmp.ne.s32.totalorder %s33_s22, %s1892_s8  ;;  %p1898_p5 = scmp.lt.s32.totalorder %s1892_s8, %s1892_s8 }
   0xe   :  { %p1899_p6 = por %p1898_p5, %p1897_p4 }
  0x10   :  { %p1900_p7 = pnand %p1899_p6, %p1893_p3 }
  0x12   :  { %1903 = shalt.err (!%p1900_p7)
}
  0x13   :  { %s2024_s9 = smov 128   ;;  %s2025_s10 = smov 8  }
  0x14   :  { %38 = dma.hbm_to_vmem [thread:$0]  %s2207_s1, 4096, %s33_s22, [#allocation7], %s2024_s9, %s2024_s9, %s2025_s10  }
  0x15   :  { %s1904_s15 = scalar_lea.hbm %s2209_s3, 2048 }
  0x16   :  { %p1905_p8 = scmp.ne.s32.totalorder %s2209_s3, %s1904_s15  ;;  %p1908_p9 = scmp.lt.u32.totalorder %s1904_s15, %s2209_s3 }
  0x18   :  { %p1910_p10 = pnand %p1908_p9, %p1905_p8 }
  0x1a   :  { %1913 = shalt.err (!%p1910_p10)
}
  0x1b   :  { %s1914_s20 = scalar_lea.vmem %s2065_s24, 2048  ;;  %p1919_p12 = scmp.lt.s32.totalorder %s2065_s24, %s2065_s24 }
  0x1c   :  { %p1915_p11 = scmp.ne.s32.totalorder %s2065_s24, %s1914_s20  ;;  %p1920_p13 = scmp.lt.s32.totalorder %s1914_s20, %s1914_s20 }
  0x1e   :  { %p1921_p0 = por %p1920_p13, %p1919_p12 }
  0x20   :  { %p1922_p1 = pnand %p1921_p0, %p1915_p11 }
  0x22   :  { %1925 = shalt.err (!%p1922_p1)
}
  0x23   :  { %62 = dma.hbm_to_vmem [thread:$0]  %s2209_s3, 2048, %s2065_s24, [#allocation10], %s2024_s9, %s2024_s9, %s2025_s10  }
  0x24   :  { %s2026_s22 = smov [#allocation3]   ;;  %s2027_s25 = smov [#allocation8]  }
  0x25   :  { %s20_s23 = sshll.u32 %s2026_s22, 4  ;;  %s44_s26 = sshll.u32 %s2027_s25, 4  ;;  %s21_s23 = int_to_ptr.vmem [resolvable:$true] %s20_s23  ;;  %s2102_s26 = int_to_ptr.vmem [resolvable:$true] %s44_s26 }
  0x26   :  { %s1926_s29 = scalar_lea.hbm %s2206_s0, 4096 }
  0x27   :  { %p1927_p2 = scmp.ne.s32.totalorder %s2206_s0, %s1926_s29  ;;  %p1930_p3 = scmp.lt.u32.totalorder %s1926_s29, %s2206_s0 }
  0x29   :  { %p1932_p4 = pnand %p1930_p3, %p1927_p2 }
  0x2b   :  { %1935 = shalt.err (!%p1932_p4)
}
  0x2c   :  { %s1936_s3 = scalar_lea.vmem %s21_s23, 4096  ;;  %p1941_p6 = scmp.lt.s32.totalorder %s21_s23, %s21_s23 }
  0x2d   :  { %p1937_p5 = scmp.ne.s32.totalorder %s21_s23, %s1936_s3  ;;  %p1942_p7 = scmp.lt.s32.totalorder %s1936_s3, %s1936_s3 }
  0x2f   :  { %p1943_p8 = por %p1942_p7, %p1941_p6 }
  0x31   :  { %p1944_p9 = pnand %p1943_p8, %p1937_p5 }
  0x33   :  { %1947 = shalt.err (!%p1944_p9)
}
  0x34   :  { %26 = dma.hbm_to_vmem [thread:$0]  %s2206_s0, 4096, %s21_s23, [#allocation4], %s2024_s9, %s2024_s9, %s2025_s10  }
  0x35   :  { %s1948_s15 = scalar_lea.hbm %s2208_s2, 4096 }
  0x36   :  { %p1949_p10 = scmp.ne.s32.totalorder %s2208_s2, %s1948_s15  ;;  %p1952_p11 = scmp.lt.u32.totalorder %s1948_s15, %s2208_s2 }
  0x38   :  { %p1954_p12 = pnand %p1952_p11, %p1949_p10 }
  0x3a   :  { %1957 = shalt.err (!%p1954_p12)
}
  0x3b   :  { %s1958_s20 = scalar_lea.vmem %s2102_s26, 4096  ;;  %p1963_p0 = scmp.lt.s32.totalorder %s2102_s26, %s2102_s26 }
  0x3c   :  { %p1959_p13 = scmp.ne.s32.totalorder %s2102_s26, %s1958_s20  ;;  %p1964_p1 = scmp.lt.s32.totalorder %s1958_s20, %s1958_s20 }
  0x3e   :  { %p1965_p2 = por %p1964_p1, %p1963_p0 }
  0x40   :  { %p1966_p3 = pnand %p1965_p2, %p1959_p13 }
  0x42   :  { %1969 = shalt.err (!%p1966_p3)
}
  0x43   :  { %50 = dma.hbm_to_vmem [thread:$0]  %s2208_s2, 4096, %s2102_s26, [#allocation7], %s2024_s9, %s2024_s9, %s2025_s10  }
  0x44   :  { %s2028_s21 = smov [#allocation11]   ;;  %s1970_s27 = scalar_lea.hbm %s2211_s5, 2048 }
  0x45   :  { %s70_s22 = sshll.u32 %s2028_s21, 4  ;;  %p1971_p4 = scmp.ne.s32.totalorder %s2211_s5, %s1970_s27  ;;  %s71_s22 = int_to_ptr.vmem [resolvable:$true] %s70_s22 }
  0x46   :  { %p1974_p5 = scmp.lt.u32.totalorder %s1970_s27, %s2211_s5 }
  0x48   :  { %p1976_p6 = pnand %p1974_p5, %p1971_p4 }
  0x4a   :  { %1979 = shalt.err (!%p1976_p6)
}
  0x4b   :  { %s1980_s8 = scalar_lea.vmem %s71_s22, 2048  ;;  %p1985_p8 = scmp.lt.s32.totalorder %s71_s22, %s71_s22 }
  0x4c   :  { %p1981_p7 = scmp.ne.s32.totalorder %s71_s22, %s1980_s8  ;;  %p1986_p9 = scmp.lt.s32.totalorder %s1980_s8, %s1980_s8 }
  0x4e   :  { %p1987_p10 = por %p1986_p9, %p1985_p8 }
  0x50   :  { %p1988_p11 = pnand %p1987_p10, %p1981_p7 }
  0x52   :  { %1991 = shalt.err (!%p1988_p11)
}
  0x53   :  { %76 = dma.hbm_to_vmem [thread:$0]  %s2211_s5, 2048, %s71_s22, [#allocation10], %s2024_s9, %s2024_s9, %s2025_s10  }
  0x54   :  { %2014 = dma.done.wait [#allocation4], 4096  }
  0x55   :  { %2015 = vsyncadd [#allocation4], 4294963200 }
  0x56   :  { %2016 = dma.done.wait [#allocation7], 8192  }
  0x57   :  { %2017 = vsyncadd [#allocation7], 4294959104 }
  0x58   :  { %2018 = dma.done.wait [#allocation10], 4096  }
  0x59   :  { %2019 = vsyncadd [#allocation10], 4294963200  ;;  %v209_v0 = vld [vmem:[#allocation6 + $0x80] sm:$0xff]  ;;  %v210_v1 = vld [vmem:[#allocation6 + $0x88] sm:$0xff] }
  0x5a   :  { %v193_v2 = vld [vmem:[#allocation6] sm:$0xff]  ;;  %v233_v3 = vpack.c.bf16 %v210_v1, %v209_v0  ;;  %v194_v4 = vld [vmem:[#allocation6 + $0x8] sm:$0xff]  ;;  %v211_v5 = vld [vmem:[#allocation6 + $0x90] sm:$0xff] }
  0x5b   :  { %v212_v6 = vld [vmem:[#allocation6 + $0x98] sm:$0xff]  ;;  %v225_v7 = vpack.c.bf16 %v194_v4, %v193_v2  ;;  %v195_v9 = vld [vmem:[#allocation6 + $0x10] sm:$0xff]  ;;  %v213_v11 = vld [vmem:[#allocation6 + $0xa0] sm:$0xff] }
  0x5c   :  { %v234_v8 = vpack.c.bf16 %v212_v6, %v211_v5  ;;  %v196_v10 = vld [vmem:[#allocation6 + $0x18] sm:$0xff]  ;;  %1330 = vmatprep.subr.bf16.mxu0 %v233_v3  ;;  %v214_v12 = vld [vmem:[#allocation6 + $0xa8] sm:$0xff]  ;;  %v197_v15 = vld [vmem:[#allocation6 + $0x20] sm:$0xff] }
  0x5d   :  { %1331 = vmatpush3.bf16.msra.mxu0 %v225_v7  ;;  %v226_v13 = vpack.c.bf16 %v196_v10, %v195_v9  ;;  %v235_v14 = vpack.c.bf16 %v214_v12, %v213_v11  ;;  %v198_v16 = vld [vmem:[#allocation6 + $0x28] sm:$0xff]  ;;  %v215_v17 = vld [vmem:[#allocation6 + $0xb0] sm:$0xff]  ;;  %v216_v18 = vld [vmem:[#allocation6 + $0xb8] sm:$0xff] }
  0x5e   :  { %1332 = vmatprep.subr.bf16.mxu0 %v234_v8  ;;  %v227_v19 = vpack.c.bf16 %v198_v16, %v197_v15  ;;  %v236_v20 = vpack.c.bf16 %v216_v18, %v215_v17  ;;  %v199_v21 = vld [vmem:[#allocation6 + $0x30] sm:$0xff]  ;;  %v200_v22 = vld [vmem:[#allocation6 + $0x38] sm:$0xff]  ;;  %v217_v23 = vld [vmem:[#allocation6 + $0xc0] sm:$0xff] }
  0x5f   :  { %v218_v24 = vld [vmem:[#allocation6 + $0xc8] sm:$0xff]  ;;  %v228_v26 = vpack.c.bf16 %v200_v22, %v199_v21  ;;  %v201_v27 = vld [vmem:[#allocation6 + $0x40] sm:$0xff]  ;;  %v219_v30 = vld [vmem:[#allocation6 + $0xd0] sm:$0xff] }
  0x60   :  { %v1836_v25 = vld [vmem:[#allocation3 + $0x4] ss:$8 sps:$4 sm:$0xff]   ;;  %v237_v28 = vpack.c.bf16 %v218_v24, %v217_v23  ;;  %v220_v31 = vld [vmem:[#allocation6 + $0xd8] sm:$0xff]  ;;  %v203_v33 = vld [vmem:[#allocation6 + $0x50] sm:$0xff] }
  0x61   :  { %1333 = vmatpush3.bf16.msra.mxu0 %v226_v13  ;;  %v202_v29 = vld [vmem:[#allocation6 + $0x48] sm:$0xff]  ;;  %433 = vmatprep.mubr.bf16.mxu0 %v1836_v25  ;;  %v238_v34 = vpack.c.bf16 %v220_v31, %v219_v30  ;;  %v204_v35 = vld [vmem:[#allocation6 + $0x58] sm:$0xff]  ;;  %v221_v36 = vld [vmem:[#allocation6 + $0xe0] sm:$0xff] }
  0x62   :  { %1334 = vmatprep.subr.bf16.mxu0 %v235_v14  ;;  %v229_v32 = vpack.c.bf16 %v202_v29, %v201_v27  ;;  %v222_v37 = vld [vmem:[#allocation6 + $0xe8] sm:$0xff]  ;;  %v230_v38 = vpack.c.bf16 %v204_v35, %v203_v33  ;;  %v205_v39 = vld [vmem:[#allocation6 + $0x60] sm:$0xff]  ;;  %v223_v42 = vld [vmem:[#allocation6 + $0xf0] sm:$0xff] }
  0x63   :  { %v239_v40 = vpack.c.bf16 %v222_v37, %v221_v36  ;;  %v206_v41 = vld [vmem:[#allocation6 + $0x68] sm:$0xff]  ;;  %v224_v43 = vld [vmem:[#allocation6 + $0xf8] sm:$0xff]  ;;  %v207_v45 = vld [vmem:[#allocation6 + $0x70] sm:$0xff] }
  0x64   :  { %v231_v44 = vpack.c.bf16 %v206_v41, %v205_v39  ;;  %v240_v46 = vpack.c.bf16 %v224_v43, %v223_v42  ;;  %v208_v47 = vld [vmem:[#allocation6 + $0x78] sm:$0xff]  ;;  %v1834_v49 = vld [vmem:[#allocation3] ss:$8 sps:$4 sm:$0xff]   ;;  %v663_v53 = vld [vmem:[#allocation9 + $0x10] sm:$0xff] }
  0x65   :  { %1335 = vmatpush3.bf16.msra.mxu0 %v227_v19  ;;  %v232_v48 = vpack.c.bf16 %v208_v47, %v207_v45  ;;  %v1837_v50 = vld [vmem:[#allocation3 + $0x14] ss:$8 sps:$4 sm:$0xff]   ;;  %v661_v51 = vld [vmem:[#allocation9] sm:$0xff]  ;;  %v662_v52 = vld [vmem:[#allocation9 + $0x8] sm:$0xff] }
  0x66   :  { %1336 = vmatprep.subr.bf16.mxu0 %v236_v20  ;;  %v1698_v54 = vpack.c.bf16 %v662_v52, %v661_v51  ;;  %v664_v55 = vld [vmem:[#allocation9 + $0x18] sm:$0xff]  ;;  %v665_v57 = vld [vmem:[#allocation9 + $0x20] sm:$0xff]  ;;  %v666_v58 = vld [vmem:[#allocation9 + $0x28] sm:$0xff] }
  0x67   :  { %v1702_v56 = vpack.c.bf16 %v664_v55, %v663_v53  ;;  %v1706_v59 = vpack.c.bf16 %v666_v58, %v665_v57  ;;  %v667_v60 = vld [vmem:[#allocation9 + $0x30] sm:$0xff]  ;;  %v668_v61 = vld [vmem:[#allocation9 + $0x38] sm:$0xff]  ;;  %v1840_v63 = vld [vmem:[#allocation3 + $0x24] ss:$8 sps:$4 sm:$0xff]  }
  0x68   :  { %1699 = vmatprep.subr.bf16.mxu1 %v1698_v54  ;;  %v1839_v62 = vld [vmem:[#allocation3 + $0x10] ss:$8 sps:$4 sm:$0xff]   ;;  %v1710_v0 = vpack.c.bf16 %v668_v61, %v667_v60  ;;  %v669_v1 = vld [vmem:[#allocation9 + $0x40] sm:$0xff]  ;;  %v670_v2 = vld [vmem:[#allocation9 + $0x48] sm:$0xff] }
  0x69   :  { %1337 = vmatpush3.bf16.msra.mxu0 %v228_v26  ;;  %1701 = vmatpush3.bf16.msra.mxu1 %v1698_v54  ;;  %v1714_v3 = vpack.c.bf16 %v670_v2, %v669_v1  ;;  %v671_v4 = vld [vmem:[#allocation9 + $0x50] sm:$0xff]  ;;  %v672_v5 = vld [vmem:[#allocation9 + $0x58] sm:$0xff]  ;;  %v1842_v6 = vld [vmem:[#allocation3 + $0x20] ss:$8 sps:$4 sm:$0xff]  }
  0x6a   :  { %1338 = vmatprep.subr.bf16.mxu0 %v237_v28  ;;  %1703 = vmatprep.subr.bf16.mxu1 %v1702_v56  ;;  %v1843_v7 = vld [vmem:[#allocation3 + $0x34] ss:$8 sps:$4 sm:$0xff]   ;;  %v1718_v8 = vpack.c.bf16 %v672_v5, %v671_v4  ;;  %v673_v9 = vld [vmem:[#allocation9 + $0x60] sm:$0xff]  ;;  %v674_v10 = vld [vmem:[#allocation9 + $0x68] sm:$0xff] }
  0x6b   :  { %v1722_v11 = vpack.c.bf16 %v674_v10, %v673_v9  ;;  %v1845_v12 = vld [vmem:[#allocation3 + $0x30] ss:$8 sps:$4 sm:$0xff]   ;;  %v1846_v13 = vld [vmem:[#allocation3 + $0x44] ss:$8 sps:$4 sm:$0xff]   ;;  %v1848_v14 = vld [vmem:[#allocation3 + $0x40] ss:$8 sps:$4 sm:$0xff]  }
  0x6c   :  { %v1849_v15 = vld [vmem:[#allocation3 + $0x54] ss:$8 sps:$4 sm:$0xff]   ;;  %v1851_v16 = vld [vmem:[#allocation3 + $0x50] ss:$8 sps:$4 sm:$0xff]   ;;  %v1852_v17 = vld [vmem:[#allocation3 + $0x64] ss:$8 sps:$4 sm:$0xff]  }
  0x6d   :  { %1339 = vmatpush3.bf16.msra.mxu0 %v229_v32  ;;  %1705 = vmatpush3.bf16.msra.mxu1 %v1702_v56  ;;  %v1854_v18 = vld [vmem:[#allocation3 + $0x60] ss:$8 sps:$4 sm:$0xff]   ;;  %v1855_v19 = vld [vmem:[#allocation3 + $0x74] ss:$8 sps:$4 sm:$0xff]   ;;  %v1857_v20 = vld [vmem:[#allocation3 + $0x70] ss:$8 sps:$4 sm:$0xff]  }
  0x6e   :  { %1340 = vmatprep.subr.bf16.mxu0 %v238_v34  ;;  %1707 = vmatprep.subr.bf16.mxu1 %v1706_v59  ;;  %v1858_v21 = vld [vmem:[#allocation3 + $0x84] ss:$8 sps:$4 sm:$0xff]   ;;  %v1860_v22 = vld [vmem:[#allocation3 + $0x80] ss:$8 sps:$4 sm:$0xff]   ;;  %v1861_v23 = vld [vmem:[#allocation3 + $0x94] ss:$8 sps:$4 sm:$0xff]  }
  0x6f   :  { %v1863_v24 = vld [vmem:[#allocation3 + $0x90] ss:$8 sps:$4 sm:$0xff]   ;;  %v1864_v25 = vld [vmem:[#allocation3 + $0xa4] ss:$8 sps:$4 sm:$0xff]   ;;  %v1866_v26 = vld [vmem:[#allocation3 + $0xa0] ss:$8 sps:$4 sm:$0xff]  }
  0x70   :  { %v1867_v27 = vld [vmem:[#allocation3 + $0xb4] ss:$8 sps:$4 sm:$0xff]   ;;  %v1869_v31 = vld [vmem:[#allocation3 + $0xb0] ss:$8 sps:$4 sm:$0xff]   ;;  %v1870_v32 = vld [vmem:[#allocation3 + $0xc4] ss:$8 sps:$4 sm:$0xff]  }
  0x71   :  { %1341 = vmatpush3.bf16.msra.mxu0 %v230_v38  ;;  %1709 = vmatpush3.bf16.msra.mxu1 %v1706_v59  ;;  %v675_v28 = vld [vmem:[#allocation9 + $0x70] sm:$0xff]  ;;  %v676_v29 = vld [vmem:[#allocation9 + $0x78] sm:$0xff]  ;;  %v1872_v33 = vld [vmem:[#allocation3 + $0xc0] ss:$8 sps:$4 sm:$0xff]  }
  0x72   :  { %1342 = vmatprep.subr.bf16.mxu0 %v239_v40  ;;  %1711 = vmatprep.subr.bf16.mxu1 %v1710_v0  ;;  %v1726_v30 = vpack.c.bf16 %v676_v29, %v675_v28  ;;  %v1873_v34 = vld [vmem:[#allocation3 + $0xd4] ss:$8 sps:$4 sm:$0xff]   ;;  %v1875_v35 = vld [vmem:[#allocation3 + $0xd0] ss:$8 sps:$4 sm:$0xff]   ;;  %v1876_v36 = vld [vmem:[#allocation3 + $0xe4] ss:$8 sps:$4 sm:$0xff]  }
  0x73   :  { %v1878_v37 = vld [vmem:[#allocation3 + $0xe0] ss:$8 sps:$4 sm:$0xff]   ;;  %v1879_v38 = vld [vmem:[#allocation3 + $0xf4] ss:$8 sps:$4 sm:$0xff]   ;;  %v1881_v39 = vld [vmem:[#allocation3 + $0xf0] ss:$8 sps:$4 sm:$0xff]  }
  0x74   :  { %v941_v40 = vld [vmem:[#allocation11] sm:$0xff]  ;;  %v942_v41 = vld [vmem:[#allocation11 + $0x8] sm:$0xff]  ;;  %v943_v45 = vld [vmem:[#allocation11 + $0x10] sm:$0xff] }
  0x75   :  { %1343 = vmatpush3.bf16.msra.mxu0 %v231_v44  ;;  %1713 = vmatpush3.bf16.msra.mxu1 %v1710_v0  ;;  %v1730_v42 = vpack.c.bf16 %v942_v41, %v941_v40  ;;  %v945_v52 = vld [vmem:[#allocation11 + $0x20] sm:$0xff]  ;;  %v946_v53 = vld [vmem:[#allocation11 + $0x28] sm:$0xff]  ;;  %v947_v57 = vld [vmem:[#allocation11 + $0x30] sm:$0xff] }
  0x76   :  { %1344 = vmatprep.subr.bf16.mxu0 %v240_v46  ;;  %1715 = vmatprep.subr.bf16.mxu1 %v1714_v3  ;;  %v944_v46 = vld [vmem:[#allocation11 + $0x18] sm:$0xff]  ;;  %v1738_v55 = vpack.c.bf16 %v946_v53, %v945_v52  ;;  %v949_v0 = vld [vmem:[#allocation11 + $0x40] sm:$0xff]  ;;  %v950_v1 = vld [vmem:[#allocation11 + $0x48] sm:$0xff] }
  0x77   :  { %v1734_v51 = vpack.c.bf16 %v944_v46, %v943_v45  ;;  %v948_v58 = vld [vmem:[#allocation11 + $0x38] sm:$0xff]  ;;  %v951_v5 = vld [vmem:[#allocation11 + $0x50] sm:$0xff] }
  0x79   :  { %1345 = vmatpush3.bf16.msra.mxu0 %v232_v48  ;;  %1717 = vmatpush3.bf16.msra.mxu1 %v1714_v3  ;;  %v1746_v3 = vpack.c.bf16 %v950_v1, %v949_v0 }
  0x7a   :  { %1719 = vmatprep.subr.bf16.mxu1 %v1718_v8 }
  0x7c   :  { %434 = vmatmul.mubr.bf16.vlgmr.msra.gmra.mrb[0].mxu0 %v1834_v49 }
  0x7d   :  { %441 = vmatprep.mubr.bf16.mxu0 %v1837_v50  ;;  %1721 = vmatpush3.bf16.msra.mxu1 %v1718_v8 }
  0x7e   :  { %1723 = vmatprep.subr.bf16.mxu1 %v1722_v11 }
  0x81   :  { %1725 = vmatpush3.bf16.msra.mxu1 %v1722_v11 }
  0x82   :  { %1727 = vmatprep.subr.bf16.mxu1 %v1726_v30 }
  0x84   :  { %442 = vmatmul.mubr.bf16.gmra.mrb[4].mxu0 %v1839_v62 }
  0x85   :  { %449 = vmatprep.mubr.bf16.mxu0 %v1840_v63  ;;  %1729 = vmatpush3.bf16.msra.mxu1 %v1726_v30  ;;  %v1742_v63 = vpack.c.bf16 %v948_v58, %v947_v57 }
  0x86   :  { %1731 = vmatprep.subr.bf16.mxu1 %v1730_v42 }
  0x8c   :  { %450 = vmatmul.mubr.bf16.gmra.mrb[8].mxu0 %v1842_v6  ;;  %v952_v6 = vld [vmem:[#allocation11 + $0x58] sm:$0xff] }
  0x8d   :  { %457 = vmatprep.mubr.bf16.mxu0 %v1843_v7  ;;  %v1750_v11 = vpack.c.bf16 %v952_v6, %v951_v5 }
  0x94   :  { %458 = vmatmul.mubr.bf16.gmra.mrb[12].mxu0 %v1845_v12  ;;  %v953_v12 = vld [vmem:[#allocation11 + $0x60] sm:$0xff] }
  0x95   :  { %465 = vmatprep.mubr.bf16.mxu0 %v1846_v13  ;;  %v954_v13 = vld [vmem:[#allocation11 + $0x68] sm:$0xff] }
  0x9c   :  { %466 = vmatmul.mubr.bf16.gmra.mrb[16].mxu0 %v1848_v14 }
  0x9d   :  { %473 = vmatprep.mubr.bf16.mxu0 %v1849_v15  ;;  %v1754_v15 = vpack.c.bf16 %v954_v13, %v953_v12 }
  0xa4   :  { %474 = vmatmul.mubr.bf16.gmra.mrb[20].mxu0 %v1851_v16 }
  0xa5   :  { %481 = vmatprep.mubr.bf16.mxu0 %v1852_v17  ;;  %v955_v17 = vld [vmem:[#allocation11 + $0x70] sm:$0xff] }
  0xac   :  { %482 = vmatmul.mubr.bf16.gmra.mrb[24].mxu0 %v1854_v18  ;;  %v956_v18 = vld [vmem:[#allocation11 + $0x78] sm:$0xff] }
  0xad   :  { %489 = vmatprep.mubr.bf16.mxu0 %v1855_v19 }
  0xb4   :  { %490 = vmatmul.mubr.bf16.gmra.mrb[28].mxu0 %v1857_v20 }
  0xb5   :  { %497 = vmatprep.mubr.bf16.mxu0 %v1858_v21 }
  0xbc   :  { %498 = vmatmul.mubr.bf16.gmra.mrb[32].mxu0 %v1860_v22 }
  0xbd   :  { %505 = vmatprep.mubr.bf16.mxu0 %v1861_v23  ;;  %v1758_v23 = vpack.c.bf16 %v956_v18, %v955_v17 }
  0xc4   :  { %506 = vmatmul.mubr.bf16.gmra.mrb[36].mxu0 %v1863_v24 }
  0xc5   :  { %513 = vmatprep.mubr.bf16.mxu0 %v1864_v25 }
  0xcc   :  { %514 = vmatmul.mubr.bf16.gmra.mrb[40].mxu0 %v1866_v26 }
  0xcd   :  { %521 = vmatprep.mubr.bf16.mxu0 %v1867_v27 }
  0xd4   :  { %522 = vmatmul.mubr.bf16.gmra.mrb[44].mxu0 %v1869_v31 }
  0xd5   :  { %529 = vmatprep.mubr.bf16.mxu0 %v1870_v32 }
  0xdc   :  { %530 = vmatmul.mubr.bf16.gmra.mrb[48].mxu0 %v1872_v33 }
  0xdd   :  { %537 = vmatprep.mubr.bf16.mxu0 %v1873_v34 }
  0xe4   :  { %538 = vmatmul.mubr.bf16.gmra.mrb[52].mxu0 %v1875_v35 }
  0xe5   :  { %545 = vmatprep.mubr.bf16.mxu0 %v1876_v36 }
  0xec   :  { %546 = vmatmul.mubr.bf16.gmra.mrb[56].mxu0 %v1878_v37 }
  0xed   :  { %553 = vmatprep.mubr.bf16.mxu0 %v1879_v38 }
  0xf4   :  { %554 = vmatmul.mubr.bf16.gmra.mrb[60].mxu0 %v1881_v39 }
 0x14f   :  { %v1346_v43 = vpop.f32.mrb[0].mxu0 }
 0x150   :  { %v1347_v44 = vpop.f32.mrb[1].mxu0 }
 0x151   :  { %v1349_v47 = vpop.f32.mrb[2].mxu0  ;;  %v1348_v48 = vadd.f32 %v1347_v44, %v1346_v43 }
 0x152   :  { %v1350_v49 = vpop.f32.mrb[3].mxu0 }
 0x153   :  { %v1351_v50 = vadd.f32 %v1350_v49, %v1349_v47  ;;  %1570 = vmatprep.mubr.f32.mxu1 %v1348_v48 }
 0x155   :  { %1571 = vmatmul.mubr.f32.vlgmr.msra.gmra.mrb[0].mxu1 %v1351_v50 }
 0x156   :  { %1733 = vmatpush3.bf16.msra.mxu1 %v1730_v42 }
 0x157   :  { %v1352_v54 = vpop.f32.mrb[4].mxu0  ;;  %1735 = vmatprep.subr.bf16.mxu1 %v1734_v51 }
 0x158   :  { %v1353_v56 = vpop.f32.mrb[5].mxu0 }
 0x159   :  { %v1354_v59 = vadd.f32 %v1353_v56, %v1352_v54  ;;  %v1355_v60 = vpop.f32.mrb[6].mxu0 }
 0x15a   :  { %v1356_v61 = vpop.f32.mrb[7].mxu0  ;;  %1737 = vmatpush3.bf16.msra.mxu1 %v1734_v51 }
 0x15b   :  { %v1357_v62 = vadd.f32 %v1356_v61, %v1355_v60  ;;  %1573 = vmatprep.mubr.f32.mxu1 %v1354_v59  ;;  %1739 = vmatprep.subr.bf16.mxu1 %v1738_v55 }
 0x15d   :  { %1574 = vmatmul.mubr.f32.gmra.mrb[2].mxu1 %v1357_v62 }
 0x15e   :  { %1741 = vmatpush3.bf16.msra.mxu1 %v1738_v55 }
 0x15f   :  { %v1358_v2 = vpop.f32.mrb[8].mxu0  ;;  %1743 = vmatprep.subr.bf16.mxu1 %v1742_v63 }
 0x160   :  { %v1359_v4 = vpop.f32.mrb[9].mxu0 }
 0x161   :  { %v1360_v7 = vadd.f32 %v1359_v4, %v1358_v2  ;;  %v1361_v8 = vpop.f32.mrb[10].mxu0 }
 0x162   :  { %v1362_v9 = vpop.f32.mrb[11].mxu0  ;;  %1745 = vmatpush3.bf16.msra.mxu1 %v1742_v63 }
 0x163   :  { %v1363_v10 = vadd.f32 %v1362_v9, %v1361_v8  ;;  %1576 = vmatprep.mubr.f32.mxu1 %v1360_v7  ;;  %1747 = vmatprep.subr.bf16.mxu1 %v1746_v3 }
 0x165   :  { %1577 = vmatmul.mubr.f32.gmra.mrb[4].mxu1 %v1363_v10 }
 0x166   :  { %1749 = vmatpush3.bf16.msra.mxu1 %v1746_v3 }
 0x167   :  { %v1364_v14 = vpop.f32.mrb[12].mxu0  ;;  %1751 = vmatprep.subr.bf16.mxu1 %v1750_v11 }
 0x168   :  { %v1365_v16 = vpop.f32.mrb[13].mxu0 }
 0x169   :  { %v1366_v19 = vadd.f32 %v1365_v16, %v1364_v14  ;;  %v1367_v20 = vpop.f32.mrb[14].mxu0 }
 0x16a   :  { %v1368_v21 = vpop.f32.mrb[15].mxu0  ;;  %1753 = vmatpush3.bf16.msra.mxu1 %v1750_v11 }
 0x16b   :  { %v1369_v22 = vadd.f32 %v1368_v21, %v1367_v20  ;;  %1579 = vmatprep.mubr.f32.mxu1 %v1366_v19  ;;  %1755 = vmatprep.subr.bf16.mxu1 %v1754_v15 }
 0x16d   :  { %1580 = vmatmul.mubr.f32.gmra.mrb[6].mxu1 %v1369_v22 }
 0x16e   :  { %1757 = vmatpush3.bf16.msra.mxu1 %v1754_v15 }
 0x16f   :  { %v1370_v24 = vpop.f32.mrb[16].mxu0  ;;  %1759 = vmatprep.subr.bf16.mxu1 %v1758_v23 }
 0x170   :  { %v1371_v25 = vpop.f32.mrb[17].mxu0 }
 0x171   :  { %v1372_v26 = vadd.f32 %v1371_v25, %v1370_v24  ;;  %v1373_v27 = vpop.f32.mrb[18].mxu0 }
 0x172   :  { %v1374_v28 = vpop.f32.mrb[19].mxu0  ;;  %1761 = vmatpush3.bf16.msra.mxu1 %v1758_v23 }
 0x173   :  { %v1375_v29 = vadd.f32 %v1374_v28, %v1373_v27  ;;  %1582 = vmatprep.mubr.f32.mxu1 %v1372_v26 }
 0x175   :  { %1583 = vmatmul.mubr.f32.gmra.mrb[8].mxu1 %v1375_v29 }
 0x177   :  { %v1376_v30 = vpop.f32.mrb[20].mxu0 }
 0x178   :  { %v1377_v31 = vpop.f32.mrb[21].mxu0 }
 0x179   :  { %v1378_v32 = vadd.f32 %v1377_v31, %v1376_v30  ;;  %v1379_v33 = vpop.f32.mrb[22].mxu0 }
 0x17a   :  { %v1380_v34 = vpop.f32.mrb[23].mxu0 }
 0x17b   :  { %v1381_v35 = vadd.f32 %v1380_v34, %v1379_v33  ;;  %1585 = vmatprep.mubr.f32.mxu1 %v1378_v32  ;;  %v909_v32 = vld [vmem:[#allocation8] sm:$0xff]  ;;  %v910_v33 = vld [vmem:[#allocation8 + $0x8] sm:$0xff]  ;;  %v911_v34 = vld [vmem:[#allocation8 + $0x10] sm:$0xff] }
 0x17d   :  { %1586 = vmatmul.mubr.f32.gmra.mrb[10].mxu1 %v1381_v35  ;;  %v912_v35 = vld [vmem:[#allocation8 + $0x18] sm:$0xff] }
 0x17f   :  { %v1382_v36 = vpop.f32.mrb[24].mxu0 }
 0x180   :  { %v1383_v37 = vpop.f32.mrb[25].mxu0 }
 0x181   :  { %v1384_v38 = vadd.f32 %v1383_v37, %v1382_v36  ;;  %v1385_v39 = vpop.f32.mrb[26].mxu0  ;;  %v913_v36 = vld [vmem:[#allocation8 + $0x20] sm:$0xff]  ;;  %v914_v37 = vld [vmem:[#allocation8 + $0x28] sm:$0xff] }
 0x182   :  { %v1386_v40 = vpop.f32.mrb[27].mxu0 }
 0x183   :  { %v1387_v41 = vadd.f32 %v1386_v40, %v1385_v39  ;;  %1588 = vmatprep.mubr.f32.mxu1 %v1384_v38  ;;  %v915_v38 = vld [vmem:[#allocation8 + $0x30] sm:$0xff]  ;;  %v916_v39 = vld [vmem:[#allocation8 + $0x38] sm:$0xff]  ;;  %v917_v40 = vld [vmem:[#allocation8 + $0x40] sm:$0xff] }
 0x185   :  { %1589 = vmatmul.mubr.f32.gmra.mrb[12].mxu1 %v1387_v41  ;;  %v918_v41 = vld [vmem:[#allocation8 + $0x48] sm:$0xff] }
 0x187   :  { %v1388_v42 = vpop.f32.mrb[28].mxu0 }
 0x188   :  { %v1389_v43 = vpop.f32.mrb[29].mxu0 }
 0x189   :  { %v1390_v44 = vadd.f32 %v1389_v43, %v1388_v42  ;;  %v1391_v45 = vpop.f32.mrb[30].mxu0  ;;  %v919_v42 = vld [vmem:[#allocation8 + $0x50] sm:$0xff]  ;;  %v920_v43 = vld [vmem:[#allocation8 + $0x58] sm:$0xff] }
 0x18a   :  { %v1392_v46 = vpop.f32.mrb[31].mxu0 }
 0x18b   :  { %v1393_v47 = vadd.f32 %v1392_v46, %v1391_v45  ;;  %1591 = vmatprep.mubr.f32.mxu1 %v1390_v44  ;;  %v921_v44 = vld [vmem:[#allocation8 + $0x60] sm:$0xff]  ;;  %v922_v45 = vld [vmem:[#allocation8 + $0x68] sm:$0xff]  ;;  %v923_v46 = vld [vmem:[#allocation8 + $0x70] sm:$0xff] }
 0x18d   :  { %1592 = vmatmul.mubr.f32.gmra.mrb[14].mxu1 %v1393_v47  ;;  %v924_v47 = vld [vmem:[#allocation8 + $0x78] sm:$0xff] }
 0x18f   :  { %v1394_v48 = vpop.f32.mrb[32].mxu0 }
 0x190   :  { %v1395_v49 = vpop.f32.mrb[33].mxu0 }
 0x191   :  { %v1396_v50 = vadd.f32 %v1395_v49, %v1394_v48  ;;  %v1397_v51 = vpop.f32.mrb[34].mxu0  ;;  %v925_v48 = vld [vmem:[#allocation8 + $0x80] sm:$0xff]  ;;  %v926_v49 = vld [vmem:[#allocation8 + $0x88] sm:$0xff] }
 0x192   :  { %v1398_v52 = vpop.f32.mrb[35].mxu0 }
 0x193   :  { %v1399_v53 = vadd.f32 %v1398_v52, %v1397_v51  ;;  %1594 = vmatprep.mubr.f32.mxu1 %v1396_v50  ;;  %v927_v50 = vld [vmem:[#allocation8 + $0x90] sm:$0xff]  ;;  %v928_v51 = vld [vmem:[#allocation8 + $0x98] sm:$0xff]  ;;  %v929_v52 = vld [vmem:[#allocation8 + $0xa0] sm:$0xff] }
 0x195   :  { %1595 = vmatmul.mubr.f32.gmra.mrb[16].mxu1 %v1399_v53  ;;  %v930_v53 = vld [vmem:[#allocation8 + $0xa8] sm:$0xff] }
 0x197   :  { %v1400_v54 = vpop.f32.mrb[36].mxu0 }
 0x198   :  { %v1401_v55 = vpop.f32.mrb[37].mxu0 }
 0x199   :  { %v1402_v56 = vadd.f32 %v1401_v55, %v1400_v54  ;;  %v1403_v57 = vpop.f32.mrb[38].mxu0  ;;  %v931_v54 = vld [vmem:[#allocation8 + $0xb0] sm:$0xff]  ;;  %v932_v55 = vld [vmem:[#allocation8 + $0xb8] sm:$0xff] }
 0x19a   :  { %v1404_v58 = vpop.f32.mrb[39].mxu0 }
 0x19b   :  { %v1405_v59 = vadd.f32 %v1404_v58, %v1403_v57  ;;  %1597 = vmatprep.mubr.f32.mxu1 %v1402_v56  ;;  %v933_v56 = vld [vmem:[#allocation8 + $0xc0] sm:$0xff]  ;;  %v934_v57 = vld [vmem:[#allocation8 + $0xc8] sm:$0xff]  ;;  %v935_v58 = vld [vmem:[#allocation8 + $0xd0] sm:$0xff] }
 0x19d   :  { %1598 = vmatmul.mubr.f32.gmra.mrb[18].mxu1 %v1405_v59  ;;  %v936_v59 = vld [vmem:[#allocation8 + $0xd8] sm:$0xff] }
 0x19f   :  { %v1406_v60 = vpop.f32.mrb[40].mxu0 }
 0x1a0   :  { %v1407_v61 = vpop.f32.mrb[41].mxu0 }
 0x1a1   :  { %v1408_v62 = vadd.f32 %v1407_v61, %v1406_v60  ;;  %v1409_v63 = vpop.f32.mrb[42].mxu0  ;;  %v937_v60 = vld [vmem:[#allocation8 + $0xe0] sm:$0xff]  ;;  %v938_v61 = vld [vmem:[#allocation8 + $0xe8] sm:$0xff] }
 0x1a2   :  { %v1410_v0 = vpop.f32.mrb[43].mxu0 }
 0x1a3   :  { %v1411_v1 = vadd.f32 %v1410_v0, %v1409_v63  ;;  %1600 = vmatprep.mubr.f32.mxu1 %v1408_v62  ;;  %v939_v62 = vld [vmem:[#allocation8 + $0xf0] sm:$0xff]  ;;  %v940_v63 = vld [vmem:[#allocation8 + $0xf8] sm:$0xff]  ;;  %v2157_v0 = vld [vmem:[%s2210_s4] ss:$0 sm:$0xff]  ;;  %s2029_s4 = smov [#allocation12]  }
 0x1a4   :  { %s1283_s3 = sshll.u32 %s2029_s4, 4  ;;  %s1284_s3 = int_to_ptr.vmem [resolvable:$true] %s1283_s3 }
 0x1a5   :  { %1601 = vmatmul.mubr.f32.gmra.mrb[20].mxu1 %v1411_v1  ;;  %s1992_s24 = scalar_lea.vmem %s1284_s3, 4096  ;;  %p1997_p13 = scmp.lt.s32.totalorder %s1284_s3, %s1284_s3 }
 0x1a6   :  { %p1993_p12 = scmp.ne.s32.totalorder %s1284_s3, %s1992_s24  ;;  %p1998_p0 = scmp.lt.s32.totalorder %s1992_s24, %s1992_s24 }
 0x1a7   :  { %v1412_v2 = vpop.f32.mrb[44].mxu0 }
 0x1a8   :  { %v1413_v3 = vpop.f32.mrb[45].mxu0  ;;  %p1999_p1 = por %p1998_p0, %p1997_p13 }
 0x1a9   :  { %v1414_v4 = vadd.f32 %v1413_v3, %v1412_v2  ;;  %v1415_v5 = vpop.f32.mrb[46].mxu0 }
 0x1aa   :  { %v1416_v6 = vpop.f32.mrb[47].mxu0  ;;  %p2000_p2 = pnand %p1999_p1, %p1993_p12 }
 0x1ab   :  { %v1417_v7 = vadd.f32 %v1416_v6, %v1415_v5  ;;  %1603 = vmatprep.mubr.f32.mxu1 %v1414_v4 }
 0x1ad   :  { %1604 = vmatmul.mubr.f32.gmra.mrb[22].mxu1 %v1417_v7 }
 0x1af   :  { %v1418_v8 = vpop.f32.mrb[48].mxu0 }
 0x1b0   :  { %v1419_v9 = vpop.f32.mrb[49].mxu0 }
 0x1b1   :  { %v1420_v10 = vadd.f32 %v1419_v9, %v1418_v8  ;;  %v1421_v11 = vpop.f32.mrb[50].mxu0 }
 0x1b2   :  { %v1422_v12 = vpop.f32.mrb[51].mxu0 }
 0x1b3   :  { %v1423_v13 = vadd.f32 %v1422_v12, %v1421_v11  ;;  %1606 = vmatprep.mubr.f32.mxu1 %v1420_v10 }
 0x1b5   :  { %1607 = vmatmul.mubr.f32.gmra.mrb[24].mxu1 %v1423_v13 }
 0x1b7   :  { %v1424_v14 = vpop.f32.mrb[52].mxu0 }
 0x1b8   :  { %v1425_v15 = vpop.f32.mrb[53].mxu0 }
 0x1b9   :  { %v1426_v16 = vadd.f32 %v1425_v15, %v1424_v14  ;;  %v1427_v17 = vpop.f32.mrb[54].mxu0 }
 0x1ba   :  { %v1428_v18 = vpop.f32.mrb[55].mxu0 }
 0x1bb   :  { %v1429_v19 = vadd.f32 %v1428_v18, %v1427_v17  ;;  %1609 = vmatprep.mubr.f32.mxu1 %v1426_v16 }
 0x1bd   :  { %1610 = vmatmul.mubr.f32.gmra.mrb[26].mxu1 %v1429_v19 }
 0x1bf   :  { %v1430_v20 = vpop.f32.mrb[56].mxu0 }
 0x1c0   :  { %v1431_v21 = vpop.f32.mrb[57].mxu0 }
 0x1c1   :  { %v1432_v22 = vadd.f32 %v1431_v21, %v1430_v20  ;;  %v1433_v23 = vpop.f32.mrb[58].mxu0 }
 0x1c2   :  { %v1434_v24 = vpop.f32.mrb[59].mxu0 }
 0x1c3   :  { %v1435_v25 = vadd.f32 %v1434_v24, %v1433_v23  ;;  %1612 = vmatprep.mubr.f32.mxu1 %v1432_v22 }
 0x1c5   :  { %1613 = vmatmul.mubr.f32.gmra.mrb[28].mxu1 %v1435_v25 }
 0x1c7   :  { %v1436_v26 = vpop.f32.mrb[60].mxu0 }
 0x1c8   :  { %v1437_v27 = vpop.f32.mrb[61].mxu0 }
 0x1c9   :  { %v1438_v28 = vadd.f32 %v1437_v27, %v1436_v26  ;;  %v1439_v29 = vpop.f32.mrb[62].mxu0 }
 0x1ca   :  { %v1440_v30 = vpop.f32.mrb[63].mxu0 }
 0x1cb   :  { %v1441_v31 = vadd.f32 %v1440_v30, %v1439_v29  ;;  %1615 = vmatprep.mubr.f32.mxu1 %v1438_v28 }
 0x1cd   :  { %1616 = vmatmul.mubr.f32.gmra.mrb[30].mxu1 %v1441_v31 }
 0x1ce   :  { %1650 = vmatprep.mubr.f32.mxu1 %v909_v32 }
 0x1d1   :  { %1651 = vmatmul.mubr.f32.vlgmr.msra.gmra.mrb[0].mxu1 %v910_v33 }
 0x1d2   :  { %1653 = vmatprep.mubr.f32.mxu1 %v911_v34 }
 0x1d5   :  { %1654 = vmatmul.mubr.f32.gmra.mrb[2].mxu1 %v912_v35 }
 0x1d6   :  { %1656 = vmatprep.mubr.f32.mxu1 %v913_v36 }
 0x1d9   :  { %1657 = vmatmul.mubr.f32.gmra.mrb[4].mxu1 %v914_v37 }
 0x1da   :  { %1659 = vmatprep.mubr.f32.mxu1 %v915_v38 }
 0x1dd   :  { %1660 = vmatmul.mubr.f32.gmra.mrb[6].mxu1 %v916_v39 }
 0x1de   :  { %1662 = vmatprep.mubr.f32.mxu1 %v917_v40 }
 0x1e1   :  { %1663 = vmatmul.mubr.f32.gmra.mrb[8].mxu1 %v918_v41 }
 0x1e2   :  { %1665 = vmatprep.mubr.f32.mxu1 %v919_v42 }
 0x1e5   :  { %1666 = vmatmul.mubr.f32.gmra.mrb[10].mxu1 %v920_v43 }
 0x1e6   :  { %1668 = vmatprep.mubr.f32.mxu1 %v921_v44 }
 0x1e9   :  { %1669 = vmatmul.mubr.f32.gmra.mrb[12].mxu1 %v922_v45 }
 0x1ea   :  { %1671 = vmatprep.mubr.f32.mxu1 %v923_v46 }
 0x1ed   :  { %1672 = vmatmul.mubr.f32.gmra.mrb[14].mxu1 %v924_v47 }
 0x1ee   :  { %1674 = vmatprep.mubr.f32.mxu1 %v925_v48 }
 0x1f1   :  { %1675 = vmatmul.mubr.f32.gmra.mrb[16].mxu1 %v926_v49 }
 0x1f2   :  { %1677 = vmatprep.mubr.f32.mxu1 %v927_v50 }
 0x1f5   :  { %1678 = vmatmul.mubr.f32.gmra.mrb[18].mxu1 %v928_v51 }
 0x1f6   :  { %1680 = vmatprep.mubr.f32.mxu1 %v929_v52 }
 0x1f9   :  { %1681 = vmatmul.mubr.f32.gmra.mrb[20].mxu1 %v930_v53 }
 0x1fa   :  { %1683 = vmatprep.mubr.f32.mxu1 %v931_v54 }
 0x1fd   :  { %1684 = vmatmul.mubr.f32.gmra.mrb[22].mxu1 %v932_v55 }
 0x1fe   :  { %1686 = vmatprep.mubr.f32.mxu1 %v933_v56 }
 0x201   :  { %1687 = vmatmul.mubr.f32.gmra.mrb[24].mxu1 %v934_v57 }
 0x202   :  { %1689 = vmatprep.mubr.f32.mxu1 %v935_v58 }
 0x205   :  { %1690 = vmatmul.mubr.f32.gmra.mrb[26].mxu1 %v936_v59 }
 0x206   :  { %1692 = vmatprep.mubr.f32.mxu1 %v937_v60 }
 0x209   :  { %1693 = vmatmul.mubr.f32.gmra.mrb[28].mxu1 %v938_v61 }
 0x20a   :  { %1695 = vmatprep.mubr.f32.mxu1 %v939_v62 }
 0x20d   :  { %1696 = vmatmul.mubr.f32.gmra.mrb[30].mxu1 %v940_v63 }
 0x2a4   :  { %v1652_v1 = vpop.f32.mrb[0].mxu1 }
 0x2a5   :  { %v1762_v2 = vadd.f32 %v1652_v1, %v2157_v0  ;;  %v1023_v3 = vpop.f32.mrb[1].mxu1 }
 0x2a6   :  { %v1763_v4 = vadd.f32 %v2157_v0, %v1023_v3 }
 0x2a7   :  { %v1215_v5 = vmax.f32 %v1762_v2, 0.0 }
 0x2a8   :  { %v1214_v6 = vmax.f32 %v1763_v4, 0.0  ;;  %v1655_v7 = vpop.f32.mrb[2].mxu1 }
 0x2a9   :  { %1247 = vst [vmem:[#allocation12 + $0x8] sm:$0xff] %v1215_v5  ;;  %v1764_v8 = vadd.f32 %v1655_v7, %v2157_v0  ;;  %v1033_v9 = vpop.f32.mrb[3].mxu1 }
 0x2aa   :  { %1246 = vst [vmem:[#allocation12] sm:$0xff] %v1214_v6  ;;  %v1765_v10 = vadd.f32 %v2157_v0, %v1033_v9 }
 0x2ab   :  { %v1217_v11 = vmax.f32 %v1764_v8, 0.0 }
 0x2ac   :  { %v1216_v12 = vmax.f32 %v1765_v10, 0.0  ;;  %v1658_v13 = vpop.f32.mrb[4].mxu1 }
 0x2ad   :  { %1249 = vst [vmem:[#allocation12 + $0x18] sm:$0xff] %v1217_v11  ;;  %v1766_v14 = vadd.f32 %v1658_v13, %v2157_v0  ;;  %v1043_v15 = vpop.f32.mrb[5].mxu1 }
 0x2ae   :  { %1248 = vst [vmem:[#allocation12 + $0x10] sm:$0xff] %v1216_v12  ;;  %v1767_v16 = vadd.f32 %v2157_v0, %v1043_v15 }
 0x2af   :  { %v1219_v17 = vmax.f32 %v1766_v14, 0.0 }
 0x2b0   :  { %v1218_v18 = vmax.f32 %v1767_v16, 0.0  ;;  %v1661_v19 = vpop.f32.mrb[6].mxu1 }
 0x2b1   :  { %1251 = vst [vmem:[#allocation12 + $0x28] sm:$0xff] %v1219_v17  ;;  %v1768_v20 = vadd.f32 %v1661_v19, %v2157_v0  ;;  %v1053_v21 = vpop.f32.mrb[7].mxu1 }
 0x2b2   :  { %1250 = vst [vmem:[#allocation12 + $0x20] sm:$0xff] %v1218_v18  ;;  %v1769_v22 = vadd.f32 %v2157_v0, %v1053_v21 }
 0x2b3   :  { %v1221_v23 = vmax.f32 %v1768_v20, 0.0 }
 0x2b4   :  { %v1220_v24 = vmax.f32 %v1769_v22, 0.0  ;;  %v1664_v25 = vpop.f32.mrb[8].mxu1 }
 0x2b5   :  { %1253 = vst [vmem:[#allocation12 + $0x38] sm:$0xff] %v1221_v23  ;;  %v1770_v26 = vadd.f32 %v1664_v25, %v2157_v0  ;;  %v1063_v27 = vpop.f32.mrb[9].mxu1 }
 0x2b6   :  { %1252 = vst [vmem:[#allocation12 + $0x30] sm:$0xff] %v1220_v24  ;;  %v1771_v28 = vadd.f32 %v2157_v0, %v1063_v27 }
 0x2b7   :  { %v1223_v29 = vmax.f32 %v1770_v26, 0.0 }
 0x2b8   :  { %v1222_v30 = vmax.f32 %v1771_v28, 0.0  ;;  %v1667_v31 = vpop.f32.mrb[10].mxu1 }
 0x2b9   :  { %1255 = vst [vmem:[#allocation12 + $0x48] sm:$0xff] %v1223_v29  ;;  %v1772_v32 = vadd.f32 %v1667_v31, %v2157_v0  ;;  %v1073_v33 = vpop.f32.mrb[11].mxu1 }
 0x2ba   :  { %1254 = vst [vmem:[#allocation12 + $0x40] sm:$0xff] %v1222_v30  ;;  %v1773_v34 = vadd.f32 %v2157_v0, %v1073_v33 }
 0x2bb   :  { %v1225_v35 = vmax.f32 %v1772_v32, 0.0 }
 0x2bc   :  { %v1224_v36 = vmax.f32 %v1773_v34, 0.0  ;;  %v1670_v37 = vpop.f32.mrb[12].mxu1 }
 0x2bd   :  { %1257 = vst [vmem:[#allocation12 + $0x58] sm:$0xff] %v1225_v35  ;;  %v1774_v38 = vadd.f32 %v1670_v37, %v2157_v0  ;;  %v1083_v39 = vpop.f32.mrb[13].mxu1 }
 0x2be   :  { %1256 = vst [vmem:[#allocation12 + $0x50] sm:$0xff] %v1224_v36  ;;  %v1775_v40 = vadd.f32 %v2157_v0, %v1083_v39 }
 0x2bf   :  { %v1227_v41 = vmax.f32 %v1774_v38, 0.0 }
 0x2c0   :  { %v1226_v42 = vmax.f32 %v1775_v40, 0.0  ;;  %v1673_v43 = vpop.f32.mrb[14].mxu1 }
 0x2c1   :  { %1259 = vst [vmem:[#allocation12 + $0x68] sm:$0xff] %v1227_v41  ;;  %v1776_v44 = vadd.f32 %v1673_v43, %v2157_v0  ;;  %v1093_v45 = vpop.f32.mrb[15].mxu1 }
 0x2c2   :  { %1258 = vst [vmem:[#allocation12 + $0x60] sm:$0xff] %v1226_v42  ;;  %v1777_v46 = vadd.f32 %v2157_v0, %v1093_v45 }
 0x2c3   :  { %v1229_v47 = vmax.f32 %v1776_v44, 0.0 }
 0x2c4   :  { %v1228_v48 = vmax.f32 %v1777_v46, 0.0  ;;  %v1676_v49 = vpop.f32.mrb[16].mxu1 }
 0x2c5   :  { %1261 = vst [vmem:[#allocation12 + $0x78] sm:$0xff] %v1229_v47  ;;  %v1778_v50 = vadd.f32 %v1676_v49, %v2157_v0  ;;  %v1103_v51 = vpop.f32.mrb[17].mxu1 }
 0x2c6   :  { %1260 = vst [vmem:[#allocation12 + $0x70] sm:$0xff] %v1228_v48  ;;  %v1779_v52 = vadd.f32 %v2157_v0, %v1103_v51 }
 0x2c7   :  { %v1231_v53 = vmax.f32 %v1778_v50, 0.0 }
 0x2c8   :  { %v1230_v54 = vmax.f32 %v1779_v52, 0.0  ;;  %v1679_v55 = vpop.f32.mrb[18].mxu1 }
 0x2c9   :  { %1263 = vst [vmem:[#allocation12 + $0x88] sm:$0xff] %v1231_v53  ;;  %v1780_v56 = vadd.f32 %v1679_v55, %v2157_v0  ;;  %v1113_v57 = vpop.f32.mrb[19].mxu1 }
 0x2ca   :  { %1262 = vst [vmem:[#allocation12 + $0x80] sm:$0xff] %v1230_v54  ;;  %v1781_v58 = vadd.f32 %v2157_v0, %v1113_v57 }
 0x2cb   :  { %v1233_v59 = vmax.f32 %v1780_v56, 0.0 }
 0x2cc   :  { %v1232_v60 = vmax.f32 %v1781_v58, 0.0  ;;  %v1682_v61 = vpop.f32.mrb[20].mxu1 }
 0x2cd   :  { %1265 = vst [vmem:[#allocation12 + $0x98] sm:$0xff] %v1233_v59  ;;  %v1782_v62 = vadd.f32 %v1682_v61, %v2157_v0  ;;  %v1123_v63 = vpop.f32.mrb[21].mxu1 }
 0x2ce   :  { %1264 = vst [vmem:[#allocation12 + $0x90] sm:$0xff] %v1232_v60  ;;  %v1783_v1 = vadd.f32 %v2157_v0, %v1123_v63 }
 0x2cf   :  { %v1235_v2 = vmax.f32 %v1782_v62, 0.0 }
 0x2d0   :  { %v1234_v3 = vmax.f32 %v1783_v1, 0.0  ;;  %v1685_v4 = vpop.f32.mrb[22].mxu1 }
 0x2d1   :  { %1267 = vst [vmem:[#allocation12 + $0xa8] sm:$0xff] %v1235_v2  ;;  %v1784_v5 = vadd.f32 %v1685_v4, %v2157_v0  ;;  %v1133_v6 = vpop.f32.mrb[23].mxu1 }
 0x2d2   :  { %1266 = vst [vmem:[#allocation12 + $0xa0] sm:$0xff] %v1234_v3  ;;  %v1785_v7 = vadd.f32 %v2157_v0, %v1133_v6 }
 0x2d3   :  { %v1237_v8 = vmax.f32 %v1784_v5, 0.0 }
 0x2d4   :  { %v1236_v9 = vmax.f32 %v1785_v7, 0.0  ;;  %v1688_v10 = vpop.f32.mrb[24].mxu1 }
 0x2d5   :  { %1269 = vst [vmem:[#allocation12 + $0xb8] sm:$0xff] %v1237_v8  ;;  %v1786_v11 = vadd.f32 %v1688_v10, %v2157_v0  ;;  %v1143_v12 = vpop.f32.mrb[25].mxu1 }
 0x2d6   :  { %1268 = vst [vmem:[#allocation12 + $0xb0] sm:$0xff] %v1236_v9  ;;  %v1787_v13 = vadd.f32 %v2157_v0, %v1143_v12 }
 0x2d7   :  { %v1239_v14 = vmax.f32 %v1786_v11, 0.0 }
 0x2d8   :  { %v1238_v15 = vmax.f32 %v1787_v13, 0.0  ;;  %v1691_v16 = vpop.f32.mrb[26].mxu1 }
 0x2d9   :  { %1271 = vst [vmem:[#allocation12 + $0xc8] sm:$0xff] %v1239_v14  ;;  %v1788_v17 = vadd.f32 %v1691_v16, %v2157_v0  ;;  %v1153_v18 = vpop.f32.mrb[27].mxu1 }
 0x2da   :  { %1270 = vst [vmem:[#allocation12 + $0xc0] sm:$0xff] %v1238_v15  ;;  %v1789_v19 = vadd.f32 %v2157_v0, %v1153_v18 }
 0x2db   :  { %v1241_v20 = vmax.f32 %v1788_v17, 0.0 }
 0x2dc   :  { %v1240_v21 = vmax.f32 %v1789_v19, 0.0  ;;  %v1694_v22 = vpop.f32.mrb[28].mxu1 }
 0x2dd   :  { %1273 = vst [vmem:[#allocation12 + $0xd8] sm:$0xff] %v1241_v20  ;;  %v1790_v23 = vadd.f32 %v1694_v22, %v2157_v0  ;;  %v1163_v24 = vpop.f32.mrb[29].mxu1 }
 0x2de   :  { %1272 = vst [vmem:[#allocation12 + $0xd0] sm:$0xff] %v1240_v21  ;;  %v1791_v25 = vadd.f32 %v2157_v0, %v1163_v24 }
 0x2df   :  { %v1243_v26 = vmax.f32 %v1790_v23, 0.0 }
 0x2e0   :  { %v1242_v27 = vmax.f32 %v1791_v25, 0.0  ;;  %v1697_v28 = vpop.f32.mrb[30].mxu1 }
 0x2e1   :  { %1275 = vst [vmem:[#allocation12 + $0xe8] sm:$0xff] %v1243_v26  ;;  %v1792_v29 = vadd.f32 %v1697_v28, %v2157_v0  ;;  %v1173_v30 = vpop.f32.mrb[31].mxu1 }
 0x2e2   :  { %1274 = vst [vmem:[#allocation12 + $0xe0] sm:$0xff] %v1242_v27  ;;  %v1793_v31 = vadd.f32 %v2157_v0, %v1173_v30 }
 0x2e3   :  { %v1245_v32 = vmax.f32 %v1792_v29, 0.0 }
 0x2e4   :  { %v1244_v33 = vmax.f32 %v1793_v31, 0.0 }
 0x2e5   :  { %1277 = vst [vmem:[#allocation12 + $0xf8] sm:$0xff] %v1245_v32 }
 0x2e6   :  { %1276 = vst [vmem:[#allocation12 + $0xf0] sm:$0xff] %v1244_v33 }
 0x2e7   :  { %2003 = shalt.err (!%p2000_p2)
}
 0x2e8   :  { %s2004_s14 = scalar_lea.hbm %s2212_s6, 4096 }
 0x2e9   :  { %p2005_p3 = scmp.ne.s32.totalorder %s2212_s6, %s2004_s14  ;;  %p2008_p4 = scmp.lt.u32.totalorder %s2004_s14, %s2212_s6 }
 0x2eb   :  { %p2010_p5 = pnand %p2008_p4, %p2005_p3 }
 0x2ed   :  { %2013 = shalt.err (!%p2010_p5)
}
 0x2ee   :  { %1289 = dma.vmem_to_hbm [thread:$0]  %s1284_s3, 4096, %s2212_s6, [#allocation5], %s2024_s9, %s2024_s9, %s2025_s10  }
 0x2ef   :  { %2020 = dma.done.wait [#allocation5], 4096  }
 0x2f0   :  { %2021 = vsyncadd [#allocation5], 4294963200 }
 0x2f1   :  { %1293 = vsyncpa [#allocation4], 1 }
 0x2f2   :  { %1294 = vsyncpa [#allocation7], 1 }
 0x2f3   :  { %1295 = vsyncpa [#allocation10], 1 }
 0x2f4   :  { %1296 = vsyncpa [#allocation5], 1 }

</bundles_post_ra>
